<compile_context>
chip_gen: v5e
topology: v5e:2x2
jax: 0.10.0
libtpu: 0.0.40
codegen_flags: <defaults>
</compile_context>

<pallas_src>
import jax
import jax.numpy as jnp
from jax import lax
from jax.experimental import pallas as pl
from jax.experimental.pallas import tpu as pltpu


# ----------------------------------------------------------------------------
# Fused kernel: ReLU + training-mode BatchNorm2d (folded scale/shift)
# ----------------------------------------------------------------------------
def double_unit_kernel(x_ref, gamma_ref, beta_ref, sel_ref, selt_ref, out_ref):
    # x_ref     : (N*C, HW) f32  -- contiguous NCHW viewed as rows x lanes
    # gamma_ref : (C, 1)   f32   -- BN weight
    # beta_ref  : (C, 1)   f32   -- BN bias
    # sel_ref   : (N*C, C) f32   -- one-hot: row i belongs to channel i % C
    # selt_ref  : (C, N*C) f32   -- transpose of sel (built host-side)
    # out_ref   : (N*C, HW) f32
    NC, HW = x_ref.shape
    C = gamma_ref.shape[0]
    inv_count = 1.0 / float((NC // C) * HW)   # 1 / (N*H*W) per channel

    z = jnp.maximum(x_ref[...], 0.0)                         # ReLU (VPU)

    # --- One-pass stats: per-row lane reductions of z and z*z -------------
    s_rows = jnp.sum(z, axis=1, keepdims=True)               # (NC, 1)
    q_rows = jnp.sum(z * z, axis=1, keepdims=True)           # (NC, 1)

    # Per-channel totals via tiny one-hot matmuls (idle MXU; avoids reshapes
    # / transposes of sub-tile arrays inside the kernel).
    sum_c = jnp.dot(selt_ref[...], s_rows,
                    preferred_element_type=jnp.float32)      # (C, 1)
    ssq_c = jnp.dot(selt_ref[...], q_rows,
                    preferred_element_type=jnp.float32)      # (C, 1)

    mean = sum_c * inv_count
    var = ssq_c * inv_count - mean * mean                    # biased variance
    inv = lax.rsqrt(var + 1e-5)                              # EUP slot

    # --- Fold affine into per-channel scale/shift --------------------------
    scale_c = inv * gamma_ref[...]                           # (C, 1)
    shift_c = beta_ref[...] - mean * scale_c                 # (C, 1)

    # Broadcast per-channel -> per-row (tiny MXU matmuls).
    scale_r = jnp.dot(sel_ref[...], scale_c,
                      preferred_element_type=jnp.float32)    # (NC, 1)
    shift_r = jnp.dot(sel_ref[...], shift_c,
                      preferred_element_type=jnp.float32)    # (NC, 1)

    # --- Normalize: 2 full-tensor VALU ops, lane-dense unmasked store ------
    out_ref[...] = (z * scale_r + shift_r).astype(out_ref.dtype)


# ----------------------------------------------------------------------------
# Wrapper: free (N*C, H*W) view of contiguous NCHW; no transposes / padding.
# ----------------------------------------------------------------------------
def double_unit_forward(x_nchw, gamma, beta):
    N, C, H, W = x_nchw.shape
    NC, HW = N * C, H * W
    x2 = x_nchw.reshape(NC, HW).astype(jnp.float32)

    # One-hot channel selector (constant, 128 B; folded by XLA).
    rows = jnp.arange(NC, dtype=jnp.int32) % C
    sel = (rows[:, None] == jnp.arange(C, dtype=jnp.int32)[None, :]).astype(
        jnp.float32)                                          # (NC, C)

    vmem = pl.BlockSpec(memory_space=pltpu.MemorySpace.VMEM)
    out = pl.pallas_call(
        double_unit_kernel,
        out_shape=jax.ShapeDtypeStruct((NC, HW), jnp.float32),
        in_specs=[vmem, vmem, vmem, vmem, vmem],
        out_specs=vmem,
    )(x2,
      gamma.reshape(C, 1).astype(jnp.float32),
      beta.reshape(C, 1).astype(jnp.float32),
      sel, sel.T)
    return out.reshape(N, C, H, W)


# ----------------------------------------------------------------------------
# Pure-JAX reference (correctness check only)
# ----------------------------------------------------------------------------
def ref_forward(x_nchw, gamma, beta, eps=1e-5):
    z = jnp.maximum(x_nchw, 0.0)
    mean = jnp.mean(z, axis=(0, 2, 3), keepdims=True)
    var = jnp.mean(jnp.square(z - mean), axis=(0, 2, 3), keepdims=True)
    g = gamma.reshape(1, -1, 1, 1)
    b = beta.reshape(1, -1, 1, 1)
    return (z - mean) / jnp.sqrt(var + eps) * g + b


if __name__ == "__main__":
    N, C, H, W = 2, 4, 16, 16
    key = jax.random.PRNGKey(0)
    kx, kg, kb = jax.random.split(key, 3)
    x = jax.random.normal(kx, (N, C, H, W), jnp.float32)       # PyTorch NCHW
    # BN affine params (fresh nn.BatchNorm2d init is ones/zeros; use generic
    # values to also exercise the affine path).
    gamma = 1.0 + 0.1 * jax.random.normal(kg, (C,), jnp.float32)
    beta = 0.1 * jax.random.normal(kb, (C,), jnp.float32)

    out = double_unit_forward(x, gamma, beta)
    jax.block_until_ready(out)

    ref = ref_forward(x, gamma, beta)
    assert out.shape == (N, C, H, W)
    assert jnp.allclose(out, ref, rtol=1e-4, atol=1e-4), (
        float(jnp.max(jnp.abs(out - ref))))

    print("KERNEL_OK")
</pallas_src>

<mosaic_0001>
module attributes {stable_mosaic.version = 11 : i64} {
  func.func @double_unit_kernel(%arg0: memref<8x256xf32, #tpu.memory_space<vmem>>, %arg1: memref<4x1xf32, #tpu.memory_space<vmem>>, %arg2: memref<4x1xf32, #tpu.memory_space<vmem>>, %arg3: memref<8x4xf32, #tpu.memory_space<vmem>>, %arg4: memref<4x8xf32, #tpu.memory_space<vmem>>, %arg5: memref<8x256xf32, #tpu.memory_space<vmem>>) attributes {dimension_semantics = [], scalar_prefetch = 0 : i64, scratch_operands = 0 : i64, tpu.core_type = #tpu.core_type<tc>} {
    %c0 = arith.constant 0 : index
    %c0_0 = arith.constant 0 : index
    %0 = vector.load %arg0[%c0, %c0_0] : memref<8x256xf32, #tpu.memory_space<vmem>>, vector<8x256xf32>
    %cst = arith.constant 0.000000e+00 : f32
    %1 = vector.broadcast %cst : f32 to vector<8x256xf32>
    %2 = arith.maximumf %0, %1 : vector<8x256xf32>
    %cst_1 = arith.constant dense<0.000000e+00> : vector<8xf32>
    %3 = vector.multi_reduction <add>, %2, %cst_1 [1] : vector<8x256xf32> to vector<8xf32>
    %4 = vector.shape_cast %3 : vector<8xf32> to vector<8x1xf32>
    %5 = arith.mulf %2, %2 : vector<8x256xf32>
    %cst_2 = arith.constant dense<0.000000e+00> : vector<8xf32>
    %6 = vector.multi_reduction <add>, %5, %cst_2 [1] : vector<8x256xf32> to vector<8xf32>
    %7 = vector.shape_cast %6 : vector<8xf32> to vector<8x1xf32>
    %c0_3 = arith.constant 0 : index
    %c0_4 = arith.constant 0 : index
    %8 = vector.load %arg4[%c0_3, %c0_4] : memref<4x8xf32, #tpu.memory_space<vmem>>, vector<4x8xf32>
    %cst_5 = arith.constant dense<0.000000e+00> : vector<4x1xf32>
    %9 = tpu.matmul %8, %4, %cst_5 {dimension_numbers = #tpu.dot_dimension_numbers<[1], [0], [0], [1], [0, 0, 1, 1], [], []>} : vector<4x8xf32>, vector<8x1xf32>, vector<4x1xf32> -> vector<4x1xf32>
    %c0_6 = arith.constant 0 : index
    %c0_7 = arith.constant 0 : index
    %10 = vector.load %arg4[%c0_6, %c0_7] : memref<4x8xf32, #tpu.memory_space<vmem>>, vector<4x8xf32>
    %cst_8 = arith.constant dense<0.000000e+00> : vector<4x1xf32>
    %11 = tpu.matmul %10, %7, %cst_8 {dimension_numbers = #tpu.dot_dimension_numbers<[1], [0], [0], [1], [0, 0, 1, 1], [], []>} : vector<4x8xf32>, vector<8x1xf32>, vector<4x1xf32> -> vector<4x1xf32>
    %cst_9 = arith.constant 0.001953125 : f32
    %12 = vector.broadcast %cst_9 : f32 to vector<4x1xf32>
    %13 = arith.mulf %9, %12 : vector<4x1xf32>
    %cst_10 = arith.constant 0.001953125 : f32
    %14 = vector.broadcast %cst_10 : f32 to vector<4x1xf32>
    %15 = arith.mulf %11, %14 : vector<4x1xf32>
    %16 = arith.mulf %13, %13 : vector<4x1xf32>
    %17 = arith.subf %15, %16 : vector<4x1xf32>
    %cst_11 = arith.constant 9.99999974E-6 : f32
    %18 = vector.broadcast %cst_11 : f32 to vector<4x1xf32>
    %19 = arith.addf %17, %18 : vector<4x1xf32>
    %20 = math.rsqrt %19 : vector<4x1xf32>
    %c0_12 = arith.constant 0 : index
    %c0_13 = arith.constant 0 : index
    %21 = vector.load %arg1[%c0_12, %c0_13] : memref<4x1xf32, #tpu.memory_space<vmem>>, vector<4x1xf32>
    %22 = arith.mulf %20, %21 : vector<4x1xf32>
    %c0_14 = arith.constant 0 : index
    %c0_15 = arith.constant 0 : index
    %23 = vector.load %arg2[%c0_14, %c0_15] : memref<4x1xf32, #tpu.memory_space<vmem>>, vector<4x1xf32>
    %24 = arith.mulf %13, %22 : vector<4x1xf32>
    %25 = arith.subf %23, %24 : vector<4x1xf32>
    %c0_16 = arith.constant 0 : index
    %c0_17 = arith.constant 0 : index
    %26 = vector.load %arg3[%c0_16, %c0_17] : memref<8x4xf32, #tpu.memory_space<vmem>>, vector<8x4xf32>
    %cst_18 = arith.constant dense<0.000000e+00> : vector<8x1xf32>
    %27 = tpu.matmul %26, %22, %cst_18 {dimension_numbers = #tpu.dot_dimension_numbers<[1], [0], [0], [1], [0, 0, 1, 1], [], []>} : vector<8x4xf32>, vector<4x1xf32>, vector<8x1xf32> -> vector<8x1xf32>
    %c0_19 = arith.constant 0 : index
    %c0_20 = arith.constant 0 : index
    %28 = vector.load %arg3[%c0_19, %c0_20] : memref<8x4xf32, #tpu.memory_space<vmem>>, vector<8x4xf32>
    %cst_21 = arith.constant dense<0.000000e+00> : vector<8x1xf32>
    %29 = tpu.matmul %28, %25, %cst_21 {dimension_numbers = #tpu.dot_dimension_numbers<[1], [0], [0], [1], [0, 0, 1, 1], [], []>} : vector<8x4xf32>, vector<4x1xf32>, vector<8x1xf32> -> vector<8x1xf32>
    %30 = vector.broadcast %27 : vector<8x1xf32> to vector<8x256xf32>
    %31 = arith.mulf %2, %30 : vector<8x256xf32>
    %32 = vector.broadcast %29 : vector<8x1xf32> to vector<8x256xf32>
    %33 = arith.addf %31, %32 : vector<8x256xf32>
    %c0_22 = arith.constant 0 : index
    %c0_23 = arith.constant 0 : index
    %34 = vector.load %arg5[%c0_22, %c0_23] : memref<8x256xf32, #tpu.memory_space<vmem>>, vector<8x256xf32>
    tpu.vector_store %arg5[%c0_22, %c0_23], %33 {strides = array<i32>} : memref<8x256xf32, #tpu.memory_space<vmem>>, vector<8x256xf32>,
    return
  }
}

</mosaic_0001>

<bundles_post_ra>
// kernel: tpu_custom_call.1
= control target key start
LH: loop header
LB: loop body
LE: loop exit
PB: predicated region body
PF: predicated region fallthrough
CT: control target
= control target key end

     0   :  { %10 = vsyncpa [#allocation3], 0  ;;  %s316_s0 = inlined_call_operand.vmem [shape: f32[8,256], index: 0, kind: input, shape index: {}]   ;;  %s317_s1 = inlined_call_operand.vmem [shape: f32[4,1], index: 1, kind: input, shape index: {}]   ;;  %s318_s2 = inlined_call_operand.vmem [shape: f32[4,1], index: 2, kind: input, shape index: {}]   ;;  %s319_s3 = inlined_call_operand.vmem [shape: f32[8,4], index: 3, kind: input, shape index: {}]   ;;  %s320_s4 = inlined_call_operand.hbm [shape: f32[4,8], index: 4, kind: input, shape index: {}]   ;;  %s321_s5 = inlined_call_operand.hbm [shape: f32[8,256], index: 5, kind: output, shape index: {}]  }
   0x1   :  { %11 = vsyncpa [#allocation4], 0  ;;  %s25_s20 = sshll.u32 %s320_s4, 4  ;;  %s262_s21 = smov [#allocation2]   ;;  %s26_s20 = int_to_ptr.hbm [resolvable:$true] %s25_s20 }
   0x2   :  { %s27_s22 = sshll.u32 %s262_s21, 4  ;;  %s28_s22 = int_to_ptr.vmem [resolvable:$true] %s27_s22 }
   0x3   :  { %30 = dma.hbm_to_vmem [thread:$0]  %s26_s20, 64, %s28_s22, [#allocation3]  }
   0x4   :  { %258 = dma.done.wait [#allocation3], 64  }
   0x5   :  { %259 = vsyncadd [#allocation3], 4294967232  ;;  %v35_v0 = vld [vmem:[%s316_s0] sm:$0xff]  ;;  %v36_v1 = vld [vmem:[%s316_s0 + $0x8] sm:$0xff]  ;;  %vm48_vm0 = vcmask 64512   ;;  %v263_v16 = vmov 0  }
   0x6   :  { %v37_v2 = vmax.f32 %v35_v0, 0.0  ;;  %v38_v3 = vmax.f32 %v36_v1, 0.0  ;;  %v47_v8 = vld [vmem:[#allocation2] sm:$0xf]  ;;  %206 = vset.pattern.permute.xlu1 %v263_v16  ;;  %207 = vset.pattern.permute.xlu0 %v263_v16  ;;  %vm117_vm4 = vcmask 1043456   ;;  %vm113_vm5 = vcmask 31744  }
   0x7   :  { %v107_v25 = vld [vmem:[%s317_s1] sm:$0xf]  ;;  %s264_s1 = smov [#allocation5]   ;;  %s187_s8 = sshll.u32 %s321_s5, 4  ;;  %s188_s8 = int_to_ptr.hbm [resolvable:$true] %s187_s8 }
   0x8   :  { %v39_v4 = vadd.f32 %v38_v3, %v37_v2  ;;  %v42_v5 = vmul.f32 %v37_v2, %v37_v2  ;;  %v43_v6 = vmul.f32 %v38_v3, %v38_v3  ;;  %v112_v28 = vld [vmem:[%s319_s3] sm:$0xff]  ;;  %s185_s3 = sshll.u32 %s264_s1, 4  ;;  %s186_s3 = int_to_ptr.vmem [resolvable:$true] %s185_s3 }
   0x9   :  { %v109_v29 = vld [vmem:[%s318_s2] sm:$0xf] }
   0xa   :  { %40 = vadd.xlane.f32.xlu0 %v39_v4  ;;  %v44_v7 = vadd.f32 %v43_v6, %v42_v5 }
  0x12   :  { %45 = vadd.xlane.f32.xlu0 %v44_v7 }
  0x7d   :  { %v41_v9 = vpop.xlane.xlu0 %40 }
  0x7e   :  { %67 = vmatpush.msra.mxu0 %v41_v9 }
  0x7f   :  { %197 = vmatmul.msk.f32.vlgmr.msra.gmra.mxu0 %vm48_vm0, %v47_v8 }
  0x85   :  { %v46_v10 = vpop.xlane.xlu0 %45 }
  0x86   :  { %87 = vmatpush.msra.mxu1 %v46_v10 }
  0x87   :  { %198 = vmatmul.msk.f32.vlgmr.msra.gmra.mxu1 %vm48_vm0, %v47_v8 }
  0xfc   :  { %v69_v11 = vpop.f32.mrf.mxu0 }
  0xfd   :  { %v92_v12 = vmul.f32 0.001953125, %v69_v11 }
  0xff   :  { %v94_v13 = vmul.f32 %v92_v12, %v92_v12 }
 0x104   :  { %v89_v14 = vpop.f32.mrf.mxu1 }
 0x105   :  { %v93_v15 = vmul.f32 0.001953125, %v89_v14 }
 0x107   :  { %v95_v17 = vsub.f32 %v93_v15, %v94_v13 }
 0x109   :  { %v96_v18 = vadd.f32 1e-05, %v95_v17 }
 0x10b   :  { %208 = vrsqrt.f32 %v96_v18  ;;  %vm103_vm2 = vweird.f32 %v96_v18 }
 0x111   :  { %v209_v19 = vpop.eup %208 }
 0x112   :  { %v98_v20 = vmul.f32 %v209_v19, %v96_v18  ;;  %vm104_vm1 = vweird.f32 %v209_v19 }
 0x113   :  { %vm105_vm3 = vmor %vm103_vm2, %vm104_vm1 }
 0x114   :  { %v99_v21 = vmul.f32 %v209_v19, %v98_v20 }
 0x116   :  { %v100_v22 = vmul.f32 0.5, %v99_v21 }
 0x118   :  { %v101_v23 = vsub.f32 1.5, %v100_v22 }
 0x11a   :  { %v102_v24 = vmul.f32 %v209_v19, %v101_v23 }
 0x11c   :  { %v106_v26 = vsel %vm105_vm3, %v209_v19, %v102_v24 }
 0x11d   :  { %v108_v27 = vmul.f32 %v107_v25, %v106_v26 }
 0x11f   :  { %199 = vmatpush.msk.msra.mxu2 %vm117_vm4, %v108_v27  ;;  %v110_v30 = vmul.f32 %v108_v27, %v92_v12 }
 0x120   :  { %200 = vmatmul.msk.f32.vlgmr.msra.gmra.mxu2 %vm113_vm5, %v112_v28 }
 0x121   :  { %v111_v31 = vsub.f32 %v109_v29, %v110_v30 }
 0x123   :  { %201 = vmatpush.msk.msra.mxu3 %vm117_vm4, %v111_v31 }
 0x124   :  { %202 = vmatmul.msk.f32.vlgmr.msra.gmra.mxu3 %vm113_vm5, %v112_v28 }
 0x1a3   :  { %v138_v32 = vpop.f32.mrf.mxu2 }
 0x1a4   :  { %166 = vperm.xlu1 %206, %v138_v32  }
 0x1a7   :  { %v161_v33 = vpop.f32.mrf.mxu3 }
 0x1ac   :  { %173 = vperm.xlu1 %206, %v161_v33  }
 0x216   :  { %v167_v34 = vpop.permute.xlu1 %166 }
 0x217   :  { %v169_v35 = vmul.f32 %v167_v34, %v37_v2  ;;  %v170_v36 = vmul.f32 %v167_v34, %v38_v3 }
 0x21e   :  { %v174_v37 = vpop.permute.xlu1 %173 }
 0x21f   :  { %v176_v38 = vadd.f32 %v174_v37, %v169_v35  ;;  %v177_v39 = vadd.f32 %v174_v37, %v170_v36 }
 0x221   :  { %178 = vst [vmem:[#allocation5] sm:$0xff] %v176_v38 }
 0x222   :  { %179 = vst [vmem:[#allocation5 + $0x8] sm:$0xff] %v177_v39 }
 0x223   :  { %190 = dma.vmem_to_hbm [thread:$0]  %s186_s3, 256, %s188_s8, [#allocation4]  }
 0x224   :  { %260 = dma.done.wait [#allocation4], 256  }
 0x225   :  { %261 = vsyncadd [#allocation4], 4294967040 }
 0x226   :  { %195 = vsyncpa [#allocation3], 1 }
 0x227   :  { %196 = vsyncpa [#allocation4], 1 }

</bundles_post_ra>
